<compile_context>
chip_gen: v7x
topology: tpu7x:2x2x1
jax: 0.10.0
libtpu: 0.0.40
codegen_flags: <defaults>
</compile_context>

<pallas_src>
import warnings

import jax
import jax.numpy as jnp
from jax import lax
from jax.experimental import pallas as pl
from jax.experimental.pallas import tpu as pltpu


_LANES = 128
_SUBLANE_UNIT = 32              # multiple of the min sublane tile for f32/bf16/int8
_NEG_LARGE = -1.0e30            # finite "-inf" (avoids inf-inf NaN paths)
_TILE_BUDGET = 4 << 20          # ~4 MiB per input tile (x2 inputs, x2 buffers)


def _default_vmem_limit():
    """Generation-aware scoped-VMEM limit (leave ~half of physical VMEM free)."""
    cap = 64 << 20
    try:
        info = pltpu.get_tpu_info()
        cap = int(getattr(info, "vmem_capacity_bytes", cap))
    except Exception:
        pass
    return (64 << 20) if cap >= (96 << 20) else (32 << 20)


_VMEM_LIMIT = _default_vmem_limit()


# ------------------------------ host helpers -------------------------------- #

def _cdiv(a, b):
    return (a + b - 1) // b


def _round_up(x, m):
    return ((x + m - 1) // m) * m


def _pick_tile(extent, unit, cap):
    """Tile size along one dim: the full extent when it fits the cap (always a
    legal block), else the largest multiple of `unit` <= cap, preferring one
    that divides `extent` (avoids a ragged last grid block)."""
    extent = int(extent)
    if extent <= cap:
        return max(extent, 1)
    cap = max((cap // unit) * unit, unit)
    t = cap
    while t >= max(unit, cap // 2):
        if extent % t == 0:
            return t
        t -= unit
    return cap


# --------------------------- element-wise losses ----------------------------- #

def _sq_err(x, y):
    d = x - y
    return d * d


def _bce_with_logits(x, y):
    # stable softplus(x) - x*y == max(x,0) - x*y + log1p(exp(-|x|))
    # exactly 2 transcendentals / element (exp + log1p) -> EUP slot stays light.
    return jnp.maximum(x, 0.0) - x * y + jnp.log1p(jnp.exp(-jnp.abs(x)))


def _make_elementwise_partial_kernel(loss_fn, total, tile_rows, needs_mask):
    """Per-tile partial sum of an element-wise loss over a (tile_rows, 128)
    lane-dense slab.  Each grid step writes its own (1, 128) lane-vector of
    sublane-reduced partial sums; the ragged-tail mask runs only on the last
    grid step (interior tiles stay mask-free)."""

    def kernel(x_ref, y_ref, o_ref):
        x = x_ref[...].astype(jnp.float32)          # in-kernel upcast (bf16 ok)
        y = y_ref[...].astype(jnp.float32)
        loss = loss_fn(x, y)

        if not needs_mask:
            o_ref[...] = jnp.sum(loss, axis=0, keepdims=True)
        else:
            pid = pl.program_id(0)
            last = pl.num_programs(0) - 1

            @pl.when(pid != last)
            def _():
                o_ref[...] = jnp.sum(loss, axis=0, keepdims=True)

            @pl.when(pid == last)
            def _():
                rows = lax.broadcasted_iota(jnp.int32, loss.shape, 0)
                cols = lax.broadcasted_iota(jnp.int32, loss.shape, 1)
                gidx = (pid * tile_rows + rows) * _LANES + cols
                masked = jnp.where(gidx < total, loss, 0.0)
                o_ref[...] = jnp.sum(masked, axis=0, keepdims=True)

    return kernel


def _elementwise_mean(loss_fn, x, y):
    x = x.reshape(-1)
    y = y.reshape(-1)
    total = int(x.shape[0])
    itemsize = max(jnp.dtype(x.dtype).itemsize, jnp.dtype(y.dtype).itemsize)

    if total % _LANES != 0:
        # TODO(synk): this <=127-element pad still costs one XLA copy of each
        # input for 128-misaligned totals; a ragged 1-D BlockSpec would avoid it
        # but 1-D iota/masking does not lower reliably on Mosaic.
        pad = _LANES - total % _LANES
        x = jnp.pad(x, (0, pad))
        y = jnp.pad(y, (0, pad))
    rows = x.shape[0] // _LANES
    xs = x.reshape(rows, _LANES)                    # free (contiguous) reshape
    ys = y.reshape(rows, _LANES)

    cap = max(_SUBLANE_UNIT,
              (_TILE_BUDGET // (_LANES * itemsize)) // _SUBLANE_UNIT * _SUBLANE_UNIT)
    tile_rows = _pick_tile(rows, _SUBLANE_UNIT, cap)
    num_tiles = _cdiv(rows, tile_rows)
    needs_mask = num_tiles * tile_rows * _LANES != total

    parts = pl.pallas_call(
        _make_elementwise_partial_kernel(loss_fn, total, tile_rows, needs_mask),
        out_shape=jax.ShapeDtypeStruct((num_tiles, _LANES), jnp.float32),
        grid_spec=pltpu.PrefetchScalarGridSpec(
            num_scalar_prefetch=0,
            grid=(num_tiles,),
            in_specs=[pl.BlockSpec((tile_rows, _LANES), lambda i: (i, 0)),
                      pl.BlockSpec((tile_rows, _LANES), lambda i: (i, 0))],
            out_specs=pl.BlockSpec((1, _LANES), lambda i: (i, 0)),
        ),
        compiler_params=pltpu.CompilerParams(
            dimension_semantics=("parallel",),
            vmem_limit_bytes=_VMEM_LIMIT),
    )(xs, ys)
    return jnp.sum(parts) / total


# ------------------------- sum of per-label RMSE ----------------------------- #

def _make_rmse_partial_kernel(n_true, tile_n):
    def kernel(x_ref, y_ref, o_ref):
        i = pl.program_id(0)
        x = x_ref[...].astype(jnp.float32)          # (tile_n, C) native row-major
        y = y_ref[...].astype(jnp.float32)
        d = x - y
        sq = d * d
        rows = i * tile_n + lax.broadcasted_iota(jnp.int32, sq.shape, 0)
        sq = jnp.where(rows < n_true, sq, 0.0)      # ragged last tile / garbage rows
        o_ref[...] = jnp.sum(sq, axis=0, keepdims=True)   # (1, C) partial SSE

    return kernel


def _rmse_sum(x, y, num_labels):
    x = x.reshape(-1, num_labels)                   # free reshape; no transpose/pad
    y = y.reshape(-1, num_labels)
    n = int(x.shape[0])
    itemsize = max(jnp.dtype(x.dtype).itemsize, jnp.dtype(y.dtype).itemsize)

    # VMEM footprint per row is lane-padded to a multiple of 128.
    lane_bytes = _round_up(num_labels, _LANES) * itemsize
    cap = max(_SUBLANE_UNIT,
              (_TILE_BUDGET // lane_bytes) // _SUBLANE_UNIT * _SUBLANE_UNIT)
    tile_n = _pick_tile(n, _SUBLANE_UNIT, cap)
    num_tiles = _cdiv(n, tile_n)

    parts = pl.pallas_call(
        _make_rmse_partial_kernel(n, tile_n),
        out_shape=jax.ShapeDtypeStruct((num_tiles, num_labels), jnp.float32),
        grid_spec=pltpu.PrefetchScalarGridSpec(
            num_scalar_prefetch=0,
            grid=(num_tiles,),
            in_specs=[pl.BlockSpec((tile_n, num_labels), lambda i: (i, 0)),
                      pl.BlockSpec((tile_n, num_labels), lambda i: (i, 0))],
            out_specs=pl.BlockSpec((1, num_labels), lambda i: (i, 0)),
        ),
        compiler_params=pltpu.CompilerParams(
            dimension_semantics=("parallel",),
            vmem_limit_bytes=_VMEM_LIMIT),
    )(x, y)
    sse = jnp.sum(parts, axis=0)                    # (num_labels,)
    return jnp.sum(jnp.sqrt(sse / n))


# -------------------- multiclass cross-entropy (online LSE) ------------------ #

def _make_cross_entropy_kernel(n_true, c_true, tile_n, tile_c):
    def kernel(labels_ref, logits_ref, loss_ref, cnt_ref, m_ref, l_ref, p_ref):
        ni = pl.program_id(0)
        ci = pl.program_id(1)
        last_c = pl.num_programs(1) - 1

        @pl.when(ci == 0)
        def _():
            m_ref[...] = jnp.full_like(m_ref, _NEG_LARGE)
            l_ref[...] = jnp.zeros_like(l_ref)
            p_ref[...] = jnp.zeros_like(p_ref)

        logits = logits_ref[...].astype(jnp.float32)        # (tile_n, tile_c)
        labels = labels_ref[...]                            # (tile_n, 1) int32

        # mask the class overhang of a ragged last class tile (no HBM pad copy)
        class_ids = ci * tile_c + lax.broadcasted_iota(jnp.int32, logits.shape, 1)
        logits = jnp.where(class_ids < c_true, logits, _NEG_LARGE)

        # online log-sum-exp across class tiles
        m_prev = m_ref[...]
        m_new = jnp.maximum(m_prev, jnp.max(logits, axis=-1, keepdims=True))
        l_ref[...] = (jnp.exp(m_prev - m_new) * l_ref[...]
                      + jnp.sum(jnp.exp(logits - m_new), axis=-1, keepdims=True))
        m_ref[...] = m_new

        # accumulate the logit at the target class (one-hot select, VPU only)
        p_ref[...] += jnp.sum(jnp.where(class_ids == labels, logits, 0.0),
                              axis=-1, keepdims=True)

        @pl.when(ci == last_c)
        def _():
            lse = m_ref[...] + jnp.log(l_ref[...])
            row_ids = ni * tile_n + lax.broadcasted_iota(jnp.int32, labels.shape, 0)
            # ignore_index (-100) rows and ragged-last-row-tile garbage rows.
            valid = (labels >= 0) & (row_ids < n_true)
            per_row = jnp.where(valid, lse - p_ref[...], 0.0)
            loss_ref[...] = jnp.sum(per_row, keepdims=True)             # (1, 1)
            cnt_ref[...] = jnp.sum(valid.astype(jnp.float32), keepdims=True)

    return kernel


def _cross_entropy(logits, labels, num_labels):
    x = logits.reshape(-1, num_labels)
    lab = labels.reshape(-1, 1).astype(jnp.int32)
    n, c = int(x.shape[0]), int(x.shape[1])
    itemsize = jnp.dtype(x.dtype).itemsize

    tile_n = _pick_tile(n, _SUBLANE_UNIT, 256)
    cls_cap = (_TILE_BUDGET // (tile_n * itemsize)) // _LANES * _LANES
    cls_cap = int(min(4096, max(_LANES, cls_cap)))
    tile_c = _pick_tile(c, _LANES, cls_cap)
    n_row_tiles = _cdiv(n, tile_n)
    n_cls_tiles = _cdiv(c, tile_c)

    loss_parts, cnt_parts = pl.pallas_call(
        _make_cross_entropy_kernel(n, c, tile_n, tile_c),
        out_shape=(jax.ShapeDtypeStruct((n_row_tiles, 1), jnp.float32),
                   jax.ShapeDtypeStruct((n_row_tiles, 1), jnp.float32)),
        grid_spec=pltpu.PrefetchScalarGridSpec(
            num_scalar_prefetch=0,
            grid=(n_row_tiles, n_cls_tiles),
            in_specs=[pl.BlockSpec((tile_n, 1), lambda i, j: (i, 0)),
                      pl.BlockSpec((tile_n, tile_c), lambda i, j: (i, j))],
            out_specs=[pl.BlockSpec((1, 1), lambda i, j: (i, 0)),
                       pl.BlockSpec((1, 1), lambda i, j: (i, 0))],
            scratch_shapes=[pltpu.VMEM((tile_n, 1), jnp.float32),   # m (running max)
                            pltpu.VMEM((tile_n, 1), jnp.float32),   # l (running sum)
                            pltpu.VMEM((tile_n, 1), jnp.float32)],  # picked logit
        ),
        compiler_params=pltpu.CompilerParams(
            dimension_semantics=("parallel", "arbitrary"),
            vmem_limit_bytes=_VMEM_LIMIT),
    )(lab, x)
    # NOTE: any negative label is treated as ignore_index (torch would raise for
    # negatives other than -100); the denominator counts only valid rows.
    return jnp.sum(loss_parts) / jnp.maximum(jnp.sum(cnt_parts), 1.0)


# ------------------------------- Criterion ----------------------------------- #

class Criterion:
    """JAX/Pallas port of multimolecule.module.criterions.generic.Criterion."""

    problem_types = ["regression", "binary", "multiclass", "multilabel"]

    def __init__(self, problem_type=None, num_labels=1):
        self.problem_type = problem_type
        self.num_labels = num_labels

    def __call__(self, logits, labels):
        if labels is None:
            return None
        if self.problem_type is None:
            # Host-side (eager) auto-detection mirroring the PyTorch heuristic.
            # TODO(synk): resolve problem_type before jit tracing; jnp.unique
            # needs concrete values and will not work under jax.jit.
            labels_arr = jnp.asarray(labels)
            if jnp.issubdtype(labels_arr.dtype, jnp.floating):
                self.problem_type = "regression"
            elif self.num_labels == 1:
                self.problem_type = "binary"
            elif int(jnp.unique(labels_arr).size) == 2:
                self.problem_type = "multilabel"
            else:
                self.problem_type = "multiclass"
            warnings.warn(f"`problem_type` is not set. Assuming {self.problem_type}.")

        logits = jnp.asarray(logits)
        labels = jnp.asarray(labels)

        if self.problem_type == "regression":
            labels = labels.astype(logits.dtype)     # as in torch; f32 upcast in-kernel
            if self.num_labels == 1:
                return _elementwise_mean(_sq_err, logits, labels)
            return _rmse_sum(logits, labels, self.num_labels)

        if self.problem_type == "multiclass":
            return _cross_entropy(logits, labels, self.num_labels)

        if self.problem_type == "binary":
            if logits.ndim == labels.ndim + 1:
                logits = jnp.squeeze(logits, axis=-1)
            labels = labels.astype(logits.dtype)
            return _elementwise_mean(_bce_with_logits, logits, labels)

        if self.problem_type == "multilabel":
            # multilabel_soft_margin_loss == mean over all elements of the
            # BCE-with-logits loss (softplus(x) - x*y) for a dense (N, C) input.
            labels = labels.astype(logits.dtype)
            return _elementwise_mean(_bce_with_logits, logits, labels)

        raise ValueError(
            f"problem_type should be one of {self.problem_types}, but got {self.problem_type}"
        )


# --------------------------------- main --------------------------------------- #

if __name__ == "__main__":
    key = jax.random.PRNGKey(0)
    k1, k2, k3, k4, k5, k6, k7, k8 = jax.random.split(key, 8)

    def softplus(x):
        return jnp.maximum(x, 0.0) + jnp.log1p(jnp.exp(-jnp.abs(x)))

    checks = []

    # 1) regression, num_labels == 1 (MSE); 8 elements exercises the ragged mask.
    lg = jax.random.normal(k1, (8,), jnp.float32)
    lb = jax.random.normal(k2, (8,), jnp.float32)
    got = Criterion("regression", 1)(lg, lb)
    ref = jnp.mean((lg - lb) ** 2)
    checks.append(("mse", got, ref))

    # 2) regression, num_labels == 4 (sum of per-column RMSE), native (N, C) tiles.
    lg = jax.random.normal(k3, (16, 4), jnp.float32)
    lb = jax.random.normal(k4, (16, 4), jnp.float32)
    got = Criterion("regression", 4)(lg, lb)
    ref = jnp.sum(jnp.sqrt(jnp.mean((lg - lb) ** 2, axis=0)))
    checks.append(("rmse_sum", got, ref))

    # 3) multiclass, num_labels == 8 (cross-entropy)
    lg = jax.random.normal(k5, (16, 8), jnp.float32)
    lb = jax.random.randint(k6, (16,), 0, 8, jnp.int32)
    got = Criterion("multiclass", 8)(lg, lb)
    m = jnp.max(lg, axis=-1, keepdims=True)
    lse = m + jnp.log(jnp.sum(jnp.exp(lg - m), axis=-1, keepdims=True))
    picked = jnp.take_along_axis(lg, lb[:, None], axis=1)
    ref = jnp.mean(lse - picked)
    checks.append(("ce", got, ref))

    # 4) binary (logits with trailing singleton dim, like the torch path)
    lg = jax.random.normal(k7, (16, 1), jnp.float32)
    lb = jax.random.randint(k8, (16,), 0, 2, jnp.int32).astype(jnp.float32)
    got = Criterion("binary", 1)(lg, lb)
    xs = jnp.squeeze(lg, -1)
    ref = jnp.mean(softplus(xs) - xs * lb)
    checks.append(("bce", got, ref))

    # 5) multilabel, num_labels == 8, bf16 logits (in-kernel upcast, aligned path)
    lg = jax.random.normal(k1, (16, 8), jnp.float32).astype(jnp.bfloat16)
    lb = jax.random.randint(k2, (16, 8), 0, 2, jnp.int32)
    got = Criterion("multilabel", 8)(lg, lb)
    x32 = lg.astype(jnp.float32)
    y32 = lb.astype(jnp.bfloat16).astype(jnp.float32)
    ref = jnp.mean(jnp.mean(y32 * softplus(-x32) + (1.0 - y32) * softplus(x32), axis=-1))
    checks.append(("multilabel", got, ref))

    # 6) multiclass with ignore_index (-100) rows
    lg = jax.random.normal(k3, (12, 5), jnp.float32)
    lb = jnp.array([0, 1, 2, -100, 4, 3, -100, 0, 1, 2, 3, 4], jnp.int32)
    got = Criterion("multiclass", 5)(lg, lb)
    m = jnp.max(lg, axis=-1, keepdims=True)
    lse = (m + jnp.log(jnp.sum(jnp.exp(lg - m), axis=-1, keepdims=True)))[:, 0]
    picked = jnp.take_along_axis(lg, jnp.maximum(lb, 0)[:, None], axis=1)[:, 0]
    mask = lb >= 0
    ref = jnp.sum(jnp.where(mask, lse - picked, 0.0)) / jnp.sum(mask)
    checks.append(("ce_ignore", got, ref))

    for name, got, ref in checks:
        got = jax.block_until_ready(got)
        assert bool(jnp.isfinite(got)), f"{name}: non-finite loss {got}"
        assert bool(jnp.allclose(got, ref, rtol=1e-4, atol=1e-5)), \
            f"{name}: got {got}, expected {ref}"

    print("KERNEL_OK")
</pallas_src>

<mosaic_0001>
module attributes {stable_mosaic.version = 11 : i64} {
  func.func @kernel(%arg0: i32, %arg1: memref<1x128xf32, #tpu.memory_space<vmem>>, %arg2: memref<1x128xf32, #tpu.memory_space<vmem>>, %arg3: memref<1x128xf32, #tpu.memory_space<vmem>>) attributes {dimension_semantics = [#tpu.dimension_semantics<parallel>], iteration_bounds = array<i64: 1>, scalar_prefetch = 0 : i64, scratch_operands = 0 : i64, tpu.core_type = #tpu.core_type<tc>, window_params = [{transform_indices = @transform_0, window_bounds = array<i64: 1, 128>}, {transform_indices = @transform_1, window_bounds = array<i64: 1, 128>}, {transform_indices = @transform_2, window_bounds = array<i64: 1, 128>}]} {
    %c0 = arith.constant 0 : index
    %c0_0 = arith.constant 0 : index
    %0 = vector.load %arg1[%c0, %c0_0] : memref<1x128xf32, #tpu.memory_space<vmem>>, vector<1x128xf32>
    %c0_1 = arith.constant 0 : index
    %c0_2 = arith.constant 0 : index
    %1 = vector.load %arg2[%c0_1, %c0_2] : memref<1x128xf32, #tpu.memory_space<vmem>>, vector<1x128xf32>
    %2 = arith.subf %0, %1 : vector<1x128xf32>
    %3 = arith.mulf %2, %2 : vector<1x128xf32>
    %c0_i32 = arith.constant 0 : i32
    %4 = arith.cmpi ne, %arg0, %c0_i32 : i32
    %5 = arith.extui %4 : i1 to i32
    %c0_i32_3 = arith.constant 0 : i32
    %6 = arith.cmpi ne, %5, %c0_i32_3 : i32
    scf.if %6 {
      %cst = arith.constant dense<0.000000e+00> : vector<128xf32>
      %10 = vector.multi_reduction <add>, %3, %cst [0] : vector<1x128xf32> to vector<128xf32>
      %11 = vector.shape_cast %10 : vector<128xf32> to vector<1x128xf32>
      %c0_6 = arith.constant 0 : index
      %c0_7 = arith.constant 0 : index
      %12 = vector.load %arg3[%c0_6, %c0_7] : memref<1x128xf32, #tpu.memory_space<vmem>>, vector<1x128xf32>
      tpu.vector_store %arg3[%c0_6, %c0_7], %11 {strides = array<i32>} : memref<1x128xf32, #tpu.memory_space<vmem>>, vector<1x128xf32>,
    } else {
    }
    %c0_i32_4 = arith.constant 0 : i32
    %7 = arith.cmpi eq, %arg0, %c0_i32_4 : i32
    %8 = arith.extui %7 : i1 to i32
    %c0_i32_5 = arith.constant 0 : i32
    %9 = arith.cmpi ne, %8, %c0_i32_5 : i32
    scf.if %9 {
      %10 = tpu.iota {dimensions = array<i32: 0>} : vector<1x128xi32>
      %11 = tpu.iota {dimensions = array<i32: 1>} : vector<1x128xi32>
      %c1_i32 = arith.constant 1 : i32
      %12 = arith.muli %arg0, %c1_i32 : i32
      %13 = vector.broadcast %12 : i32 to vector<1x128xi32>
      %14 = arith.addi %13, %10 : vector<1x128xi32>
      %c128_i32 = arith.constant 128 : i32
      %15 = vector.broadcast %c128_i32 : i32 to vector<1x128xi32>
      %16 = arith.muli %14, %15 : vector<1x128xi32>
      %17 = arith.addi %16, %11 : vector<1x128xi32>
      %c8_i32 = arith.constant 8 : i32
      %18 = vector.broadcast %c8_i32 : i32 to vector<1x128xi32>
      %19 = arith.cmpi slt, %17, %18 : vector<1x128xi32>
      %cst = arith.constant 0.000000e+00 : f32
      %20 = vector.broadcast %cst : f32 to vector<1x128xf32>
      %21 = arith.select %19, %3, %20 : vector<1x128xi1>, vector<1x128xf32>
      %cst_6 = arith.constant dense<0.000000e+00> : vector<128xf32>
      %22 = vector.multi_reduction <add>, %21, %cst_6 [0] : vector<1x128xf32> to vector<128xf32>
      %23 = vector.shape_cast %22 : vector<128xf32> to vector<1x128xf32>
      %c0_7 = arith.constant 0 : index
      %c0_8 = arith.constant 0 : index
      %24 = vector.load %arg3[%c0_7, %c0_8] : memref<1x128xf32, #tpu.memory_space<vmem>>, vector<1x128xf32>
      tpu.vector_store %arg3[%c0_7, %c0_8], %23 {strides = array<i32>} : memref<1x128xf32, #tpu.memory_space<vmem>>, vector<1x128xf32>,
    } else {
    }
    return
  }
  func.func @transform_0(%arg0: i32) -> (i32, i32) {
    %c0_i32 = arith.constant 0 : i32
    %c0_i32_0 = arith.constant 0 : i32
    return %arg0, %c0_i32 : i32, i32
  }
  func.func @transform_1(%arg0: i32) -> (i32, i32) {
    %c0_i32 = arith.constant 0 : i32
    %c0_i32_0 = arith.constant 0 : i32
    return %arg0, %c0_i32 : i32, i32
  }
  func.func @transform_2(%arg0: i32) -> (i32, i32) {
    %c0_i32 = arith.constant 0 : i32
    %c0_i32_0 = arith.constant 0 : i32
    return %arg0, %c0_i32 : i32, i32
  }
}

</mosaic_0001>

<bundles_post_ra>
// kernel: tpu_custom_call.1
= control target key start
LH: loop header
LB: loop body
LE: loop exit
PB: predicated region body
PF: predicated region fallthrough
CT: control target
= control target key end

     0   :  { %7 = vsyncpa [#allocation3], 0  ;;  %s159_s0 = inlined_call_operand.hbm [shape: f32[1,128], index: 0, kind: input, shape index: {}]   ;;  %s160_s1 = inlined_call_operand.vmem [shape: f32[1,128], index: 1, kind: input, shape index: {}]   ;;  %s161_s2 = inlined_call_operand.hbm [shape: f32[1,128], index: 2, kind: output, shape index: {}]  }
   0x1   :  { %8 = vsyncpa [#allocation4], 0  ;;  %s115_s9 = smov [#allocation2]   ;;  %s67_s13 = scalar_lea.hbm %s159_s0, 16 }
   0x2   :  { %s15_s10 = sshll.u32 %s115_s9, 4  ;;  %p68_p0 = scmp.ne.s32.totalorder %s159_s0, %s67_s13  ;;  %s16_s10 = int_to_ptr.vmem [resolvable:$true] %s15_s10 }
   0x3   :  { %p71_p1 = scmp.lt.u32.totalorder %s67_s13, %s159_s0 }
   0x5   :  { %p73_p2 = pnand %p71_p1, %p68_p0 }
   0x7   :  { %76 = shalt.err (!%p73_p2)
}
   0x8   :  { %s77_s18 = scalar_lea.vmem %s16_s10, 16  ;;  %s81_s19 = scalar_lea.vmem %s16_s10, 32 }
   0x9   :  { %p78_p3 = scmp.ne.s32.totalorder %s16_s10, %s77_s18  ;;  %p82_p4 = scmp.lt.s32.totalorder %s16_s10, %s16_s10 }
   0xa   :  { %p83_p5 = scmp.lt.s32.totalorder %s81_s19, %s77_s18 }
   0xc   :  { %p84_p6 = por %p83_p5, %p82_p4 }
   0xe   :  { %p85_p7 = pnand %p84_p6, %p78_p3 }
  0x10   :  { %88 = shalt.err (!%p85_p7)
}
  0x11   :  { %18 = dma.hbm_to_vmem [thread:$0]  %s159_s0, 16, %s16_s10, [#allocation3]  }
  0x12   :  { %111 = dma.done.wait [#allocation3], 16  }
  0x13   :  { %112 = vsyncadd [#allocation3], 4294967280  ;;  %v38_v0 = vlaneseq  ;;  %v24_v5 = vld [vmem:[#allocation2] sm:$0x1]  ;;  %s116_s24 = smov [#allocation5]  }
  0x14   :  { %v25_v6 = vld [vmem:[%s160_s1] sm:$0x1]  ;;  %s56_s25 = sshll.u32 %s116_s24, 4  ;;  %s57_s25 = int_to_ptr.vmem [resolvable:$true] %s56_s25 }
  0x15   :  { %v39_v1 = vshrl.u32 %v38_v0, 7  ;;  %v41_v2 = vand.u32 127, %v38_v0  ;;  %v26_v7 = vsub.f32 %v24_v5, %v25_v6  ;;  %s89_s0 = scalar_lea.vmem %s57_s25, 16  ;;  %s93_s26 = scalar_lea.vmem %s57_s25, 32 }
  0x16   :  { %p90_p8 = scmp.ne.s32.totalorder %s57_s25, %s89_s0  ;;  %p94_p9 = scmp.lt.s32.totalorder %s57_s25, %s57_s25 }
  0x17   :  { %v44_v3 = vmul.u32 128, %v39_v1  ;;  %v27_v8 = vmul.f32 %v26_v7, %v26_v7  ;;  %p95_p10 = scmp.lt.s32.totalorder %s93_s26, %s89_s0 }
  0x19   :  { %v45_v4 = vadd.s32 %v44_v3, %v41_v2  ;;  %p96_p11 = por %p95_p10, %p94_p9 }
  0x1b   :  { %vm46_vm0 = vcmp.lt.s32.totalorder %v45_v4, 8  ;;  %p97_p12 = pnand %p96_p11, %p90_p8 }
  0x1c   :  { %v47_v9 = vsel %vm46_vm0, %v27_v8, 0.0 }
  0x1d   :  { %49 = vst [vmem:[#allocation5] sm:$0x1] %v47_v9 }
  0x1e   :  { %100 = shalt.err (!%p97_p12)
}
  0x1f   :  { %s101_s1 = scalar_lea.hbm %s161_s2, 16 }
  0x20   :  { %p102_p13 = scmp.ne.s32.totalorder %s161_s2, %s101_s1  ;;  %p105_p0 = scmp.lt.u32.totalorder %s101_s1, %s161_s2 }
  0x22   :  { %p107_p1 = pnand %p105_p0, %p102_p13 }
  0x24   :  { %110 = shalt.err (!%p107_p1)
}
  0x25   :  { %59 = dma.vmem_to_hbm [thread:$0]  %s57_s25, 16, %s161_s2, [#allocation4]  }
  0x26   :  { %113 = dma.done.wait [#allocation4], 16  }
  0x27   :  { %114 = vsyncadd [#allocation4], 4294967280 }
  0x28   :  { %63 = vsyncpa [#allocation3], 1 }
  0x29   :  { %64 = vsyncpa [#allocation4], 1 }

</bundles_post_ra>
